<compile_context>
chip_gen: v5e
topology: v5e:2x2
jax: 0.10.0
libtpu: 0.0.40
codegen_flags: <defaults>
</compile_context>

<pallas_src>
import functools

import jax
import jax.numpy as jnp
from jax.experimental import pallas as pl
from jax.experimental.pallas import tpu as pltpu


def encoder_lstm_kernel(x_ref, w_ref, b_ref, hout_ref, cout_ref, seq_sc):
    """One grid step == one LSTM layer over the full sequence.

    x_ref   : (S, B, Fmax)      embedded input, feature dim zero-padded to Fmax
    w_ref   : (1, Fmax+H, 4H)   this layer's stacked [W_ih^T ; W_hh^T]
    b_ref   : (1, 1, 4H)        this layer's b_ih + b_hh
    hout_ref: (1, B, H)         final hidden state of this layer
    cout_ref: (1, B, H)         final cell state of this layer
    seq_sc  : (S, B, Fmax)      VMEM scratch: layer input / output sequence
    """
    layer = pl.program_id(0)
    S, B, Fmax = seq_sc.shape
    H = hout_ref.shape[-1]

    # Layer 0 consumes the embedded input; later layers consume the previous
    # layer's outputs already sitting in seq_sc.
    @pl.when(layer == 0)
    def _():
        seq_sc[...] = x_ref[...]

    w = w_ref[0]                                            # (Fmax+H, 4H)
    # Hoisted out of the time loop (broadcast once per layer).
    bias = jnp.broadcast_to(b_ref[0], (B, 4 * H)).astype(jnp.float32)

    def step(t, carry):
        h, c = carry                                        # (B, H) f32 each
        x_t = seq_sc[t]                                     # (B, Fmax) f32
        xh = jnp.concatenate([x_t, h], axis=-1)             # (B, Fmax+H)
        # Single fused MXU matmul; cast operand to the weight dtype (bf16 on
        # v6e/v7x), accumulate in f32.
        gates = jnp.dot(xh.astype(w.dtype), w,
                        preferred_element_type=jnp.float32) + bias  # (B, 4H)

        # PyTorch gate order: i, f, g, o.
        i = jax.nn.sigmoid(gates[:, 0 * H:1 * H])
        f = jax.nn.sigmoid(gates[:, 1 * H:2 * H])
        g = jnp.tanh(gates[:, 2 * H:3 * H])
        o = jax.nn.sigmoid(gates[:, 3 * H:4 * H])

        c_new = f * c + i * g
        h_new = o * jnp.tanh(c_new)

        # Write this layer's output back into the sequence scratch so it
        # becomes the next layer's input (extra columns, if any, multiply
        # zero-padded weight rows, so zero padding is sufficient).
        if Fmax > H:
            h_store = jnp.pad(h_new, ((0, 0), (0, Fmax - H)))
        else:
            h_store = h_new
        seq_sc[t] = h_store
        return h_new, c_new

    h0 = jnp.zeros((B, H), jnp.float32)
    c0 = jnp.zeros((B, H), jnp.float32)
    h_n, c_n = jax.lax.fori_loop(0, S, step, (h0, c0), unroll=True)

    hout_ref[0] = h_n.astype(hout_ref.dtype)
    cout_ref[0] = c_n.astype(cout_ref.dtype)


def encoder_forward(params, input_ids, *, matmul_dtype=jnp.bfloat16):
    """input_ids: (S, B) int32 -> (hidden_state, cells), each (n_layers, B, H)."""
    # Embedding lookup (a gather; no matmul hot path -> plain-JAX glue).
    x = jnp.take(params["embedding"], input_ids, axis=0)    # (S, B, E) f32
    S, B, E = x.shape
    layers = params["lstm"]
    n_layers = len(layers)
    H = layers[0]["w_hh"].shape[1]

    Fmax = max(E, H)          # common padded input-feature width for all layers
    Fcat = Fmax + H           # fused [x_t, h] width

    if Fmax > E:
        x = jnp.pad(x, ((0, 0), (0, 0), (0, Fmax - E)))      # (S, B, Fmax)

    # Stack per-layer fused weights [W_ih^T ; W_hh^T] and biases once.
    w_stack, b_stack = [], []
    for layer in layers:
        w_ih_t = jnp.transpose(layer["w_ih"])                # (in_f, 4H)
        w_hh_t = jnp.transpose(layer["w_hh"])                # (H, 4H)
        in_f = w_ih_t.shape[0]
        if Fmax > in_f:
            w_ih_t = jnp.pad(w_ih_t, ((0, Fmax - in_f), (0, 0)))
        w_stack.append(jnp.concatenate([w_ih_t, w_hh_t], axis=0))   # (Fcat, 4H)
        b_stack.append((layer["b_ih"] + layer["b_hh"]).reshape(1, 4 * H))
    w_all = jnp.stack(w_stack, axis=0).astype(matmul_dtype)  # (L, Fcat, 4H)
    b_all = jnp.stack(b_stack, axis=0).astype(jnp.float32)   # (L, 1, 4H)

    grid_spec = pltpu.PrefetchScalarGridSpec(
        num_scalar_prefetch=0,
        grid=(n_layers,),
        in_specs=[
            # Constant block index -> fetched once, not re-DMA'd per layer.
            pl.BlockSpec((S, B, Fmax), lambda l: (0, 0, 0)),
            pl.BlockSpec((1, Fcat, 4 * H), lambda l: (l, 0, 0)),
            pl.BlockSpec((1, 1, 4 * H), lambda l: (l, 0, 0)),
        ],
        out_specs=[
            pl.BlockSpec((1, B, H), lambda l: (l, 0, 0)),
            pl.BlockSpec((1, B, H), lambda l: (l, 0, 0)),
        ],
        scratch_shapes=[
            pltpu.VMEM((S, B, Fmax), jnp.float32),   # inter-layer sequence
        ],
    )

    hidden_state, cells = pl.pallas_call(
        encoder_lstm_kernel,
        out_shape=(
            jax.ShapeDtypeStruct((n_layers, B, H), jnp.float32),
            jax.ShapeDtypeStruct((n_layers, B, H), jnp.float32),
        ),
        grid_spec=grid_spec,
        compiler_params=pltpu.CompilerParams(
            # Layers are sequentially dependent through the VMEM scratch.
            dimension_semantics=("arbitrary",)),
    )(x.astype(jnp.float32), w_all, b_all)
    return hidden_state, cells


def init_params(key, input_dim, embedding_dim, hidden_dim, n_layers):
    keys = jax.random.split(key, 1 + 4 * n_layers)
    k = 1.0 / float(hidden_dim) ** 0.5
    params = {
        "embedding": jax.random.normal(
            keys[0], (input_dim, embedding_dim), jnp.float32),
        "lstm": [],
    }
    for l in range(n_layers):
        in_f = embedding_dim if l == 0 else hidden_dim
        kk = keys[1 + 4 * l: 1 + 4 * (l + 1)]
        params["lstm"].append({
            "w_ih": jax.random.uniform(kk[0], (4 * hidden_dim, in_f),
                                       jnp.float32, -k, k),
            "w_hh": jax.random.uniform(kk[1], (4 * hidden_dim, hidden_dim),
                                       jnp.float32, -k, k),
            "b_ih": jax.random.uniform(kk[2], (4 * hidden_dim,),
                                       jnp.float32, -k, k),
            "b_hh": jax.random.uniform(kk[3], (4 * hidden_dim,),
                                       jnp.float32, -k, k),
        })
    return params


def _lstm_layer_ref(x, w_ih, w_hh, b_ih, b_hh):
    S, B, _ = x.shape
    H = w_hh.shape[1]

    def step(carry, x_t):
        h, c = carry
        gates = x_t @ w_ih.T + h @ w_hh.T + b_ih + b_hh
        i, f, g, o = jnp.split(gates, 4, axis=-1)
        i = jax.nn.sigmoid(i)
        f = jax.nn.sigmoid(f)
        g = jnp.tanh(g)
        o = jax.nn.sigmoid(o)
        c = f * c + i * g
        h = o * jnp.tanh(c)
        return (h, c), h

    init = (jnp.zeros((B, H), jnp.float32), jnp.zeros((B, H), jnp.float32))
    (h_n, c_n), ys = jax.lax.scan(step, init, x)
    return ys, h_n, c_n


def encoder_forward_ref(params, input_ids):
    x = jnp.take(params["embedding"], input_ids, axis=0)
    hs, cs = [], []
    for layer in params["lstm"]:
        x, h_n, c_n = _lstm_layer_ref(x, layer["w_ih"], layer["w_hh"],
                                      layer["b_ih"], layer["b_hh"])
        hs.append(h_n)
        cs.append(c_n)
    return jnp.stack(hs, axis=0), jnp.stack(cs, axis=0)


if __name__ == "__main__":
    INPUT_DIM = 50       # vocab size
    EMBEDDING_DIM = 16
    HIDDEN_DIM = 32
    N_LAYERS = 2
    SEQ_LEN = 8
    BATCH = 2            # NOTE: production should pad/batch B >= 8 (sublanes)

    key = jax.random.PRNGKey(0)
    k_param, k_ids = jax.random.split(key)
    params = init_params(k_param, INPUT_DIM, EMBEDDING_DIM, HIDDEN_DIM, N_LAYERS)
    input_ids = jax.random.randint(k_ids, (SEQ_LEN, BATCH), 0, INPUT_DIM,
                                   dtype=jnp.int32)

    fwd_bf16 = jax.jit(functools.partial(encoder_forward,
                                         matmul_dtype=jnp.bfloat16))
    fwd_f32 = jax.jit(functools.partial(encoder_forward,
                                        matmul_dtype=jnp.float32))

    # Main (v6e/v7x-recommended) bf16-MXU path.
    hidden_state, cells = jax.block_until_ready(fwd_bf16(params, input_ids))
    # f32-MXU path (tight check / v5e-style).
    h_f32, c_f32 = jax.block_until_ready(fwd_f32(params, input_ids))

    # Pure-JAX f32 reference.
    h_ref, c_ref = encoder_forward_ref(params, input_ids)

    assert hidden_state.shape == (N_LAYERS, BATCH, HIDDEN_DIM)
    assert cells.shape == (N_LAYERS, BATCH, HIDDEN_DIM)
    assert jnp.allclose(h_f32, h_ref, atol=2e-3, rtol=2e-3)
    assert jnp.allclose(c_f32, c_ref, atol=2e-3, rtol=2e-3)
    assert jnp.allclose(hidden_state, h_ref, atol=5e-2, rtol=5e-2)
    assert jnp.allclose(cells, c_ref, atol=5e-2, rtol=5e-2)

    print("KERNEL_OK")
</pallas_src>

<mosaic_0001>
module attributes {stable_mosaic.version = 11 : i64} {
  func.func @encoder_lstm_kernel(%arg0: i32, %arg1: memref<8x2x32xf32, #tpu.memory_space<vmem>>, %arg2: memref<1x64x128xbf16, #tpu.memory_space<vmem>>, %arg3: memref<1x1x128xf32, #tpu.memory_space<vmem>>, %arg4: memref<1x2x32xf32, #tpu.memory_space<vmem>>, %arg5: memref<1x2x32xf32, #tpu.memory_space<vmem>>, %arg6: memref<8x2x32xf32, #tpu.memory_space<vmem>>) attributes {dimension_semantics = [#tpu.dimension_semantics<arbitrary>], iteration_bounds = array<i64: 2>, scalar_prefetch = 0 : i64, scratch_operands = 1 : i64, tpu.core_type = #tpu.core_type<tc>, window_params = [{pipeline_mode = #tpu.pipeline_mode<synchronous>, transform_indices = @transform_0, window_bounds = array<i64: 8, 2, 32>}, {transform_indices = @transform_1, window_bounds = array<i64: 1, 64, 128>}, {transform_indices = @transform_2, window_bounds = array<i64: 1, 1, 128>}, {transform_indices = @transform_3, window_bounds = array<i64: 1, 2, 32>}, {transform_indices = @transform_4, window_bounds = array<i64: 1, 2, 32>}]} {
    %c0_i32 = arith.constant 0 : i32
    %0 = arith.cmpi eq, %arg0, %c0_i32 : i32
    %1 = arith.extui %0 : i1 to i32
    %c0_i32_0 = arith.constant 0 : i32
    %2 = arith.cmpi ne, %1, %c0_i32_0 : i32
    scf.if %2 {
      %c0_78 = arith.constant 0 : index
      %c0_79 = arith.constant 0 : index
      %c0_80 = arith.constant 0 : index
      %305 = vector.load %arg1[%c0_78, %c0_79, %c0_80] : memref<8x2x32xf32, #tpu.memory_space<vmem>>, vector<8x2x32xf32>
      %c0_81 = arith.constant 0 : index
      %c0_82 = arith.constant 0 : index
      %c0_83 = arith.constant 0 : index
      %306 = vector.load %arg6[%c0_81, %c0_82, %c0_83] : memref<8x2x32xf32, #tpu.memory_space<vmem>>, vector<8x2x32xf32>
      tpu.vector_store %arg6[%c0_81, %c0_82, %c0_83], %305 {strides = array<i32>} : memref<8x2x32xf32, #tpu.memory_space<vmem>>, vector<8x2x32xf32>,
    } else {
    }
    %c0 = arith.constant 0 : index
    %c0_1 = arith.constant 0 : index
    %c0_2 = arith.constant 0 : index
    %3 = vector.load %arg2[%c0, %c0_1, %c0_2] : memref<1x64x128xbf16, #tpu.memory_space<vmem>>, vector<1x64x128xbf16>
    %4 = vector.shape_cast %3 : vector<1x64x128xbf16> to vector<64x128xbf16>
    %c0_3 = arith.constant 0 : index
    %c0_4 = arith.constant 0 : index
    %c0_5 = arith.constant 0 : index
    %5 = vector.load %arg3[%c0_3, %c0_4, %c0_5] : memref<1x1x128xf32, #tpu.memory_space<vmem>>, vector<1x1x128xf32>
    %6 = vector.shape_cast %5 : vector<1x1x128xf32> to vector<1x128xf32>
    %7 = vector.shape_cast %6 : vector<1x128xf32> to vector<1x128xf32>
    %8 = vector.broadcast %7 : vector<1x128xf32> to vector<2x128xf32>
    %cst = arith.constant 0.000000e+00 : f32
    %9 = vector.broadcast %cst : f32 to vector<2x32xf32>
    %cst_6 = arith.constant 0.000000e+00 : f32
    %10 = vector.broadcast %cst_6 : f32 to vector<2x32xf32>
    %c0_i32_7 = arith.constant 0 : i32
    %11 = arith.index_cast %c0_i32_7 : i32 to index
    %c0_8 = arith.constant 0 : index
    %c0_9 = arith.constant 0 : index
    %12 = vector.load %arg6[%11, %c0_8, %c0_9] : memref<8x2x32xf32, #tpu.memory_space<vmem>>, vector<1x2x32xf32>
    %13 = vector.shape_cast %12 : vector<1x2x32xf32> to vector<2x32xf32>
    %14 = tpu.concatenate %13, %9 in 1 : vector<2x32xf32>, vector<2x32xf32> -> vector<2x64xf32>
    %15 = arith.truncf %14 : vector<2x64xf32> to vector<2x64xbf16>
    %cst_10 = arith.constant dense<0.000000e+00> : vector<2x128xf32>
    %16 = tpu.matmul %15, %4, %cst_10 {dimension_numbers = #tpu.dot_dimension_numbers<[1], [0], [0], [1], [0, 0, 1, 1], [], []>} : vector<2x64xbf16>, vector<64x128xbf16>, vector<2x128xf32> -> vector<2x128xf32>
    %17 = arith.addf %16, %8 : vector<2x128xf32>
    %18 = vector.extract_strided_slice %17 {offsets = [0, 0], sizes = [2, 32], strides = [1, 1]} : vector<2x128xf32> to vector<2x32xf32>
    %19 = arith.negf %18 : vector<2x32xf32>
    %20 = math.exp %19 : vector<2x32xf32>
    %cst_11 = arith.constant 1.000000e+00 : f32
    %21 = vector.broadcast %cst_11 : f32 to vector<2x32xf32>
    %22 = arith.addf %21, %20 : vector<2x32xf32>
    %23 = arith.divf %21, %22 : vector<2x32xf32>
    %24 = vector.extract_strided_slice %17 {offsets = [0, 32], sizes = [2, 32], strides = [1, 1]} : vector<2x128xf32> to vector<2x32xf32>
    %25 = arith.negf %24 : vector<2x32xf32>
    %26 = math.exp %25 : vector<2x32xf32>
    %cst_12 = arith.constant 1.000000e+00 : f32
    %27 = vector.broadcast %cst_12 : f32 to vector<2x32xf32>
    %28 = arith.addf %27, %26 : vector<2x32xf32>
    %29 = arith.divf %27, %28 : vector<2x32xf32>
    %30 = vector.extract_strided_slice %17 {offsets = [0, 64], sizes = [2, 32], strides = [1, 1]} : vector<2x128xf32> to vector<2x32xf32>
    %31 = math.tanh %30 : vector<2x32xf32>
    %32 = vector.extract_strided_slice %17 {offsets = [0, 96], sizes = [2, 32], strides = [1, 1]} : vector<2x128xf32> to vector<2x32xf32>
    %33 = arith.negf %32 : vector<2x32xf32>
    %34 = math.exp %33 : vector<2x32xf32>
    %cst_13 = arith.constant 1.000000e+00 : f32
    %35 = vector.broadcast %cst_13 : f32 to vector<2x32xf32>
    %36 = arith.addf %35, %34 : vector<2x32xf32>
    %37 = arith.divf %35, %36 : vector<2x32xf32>
    %38 = arith.mulf %29, %10 : vector<2x32xf32>
    %39 = arith.mulf %23, %31 : vector<2x32xf32>
    %40 = arith.addf %38, %39 : vector<2x32xf32>
    %41 = math.tanh %40 : vector<2x32xf32>
    %42 = arith.mulf %37, %41 : vector<2x32xf32>
    %43 = arith.index_cast %c0_i32_7 : i32 to index
    %c0_14 = arith.constant 0 : index
    %c0_15 = arith.constant 0 : index
    %44 = vector.load %arg6[%43, %c0_14, %c0_15] : memref<8x2x32xf32, #tpu.memory_space<vmem>>, vector<1x2x32xf32>
    %45 = vector.shape_cast %44 : vector<1x2x32xf32> to vector<2x32xf32>
    %46 = vector.shape_cast %42 : vector<2x32xf32> to vector<1x2x32xf32>
    tpu.vector_store %arg6[%43, %c0_14, %c0_15], %46 {strides = array<i32>} : memref<8x2x32xf32, #tpu.memory_space<vmem>>, vector<1x2x32xf32>,
    %c1_i32 = arith.constant 1 : i32
    %47 = arith.index_cast %c1_i32 : i32 to index
    %c0_16 = arith.constant 0 : index
    %c0_17 = arith.constant 0 : index
    %48 = vector.load %arg6[%47, %c0_16, %c0_17] : memref<8x2x32xf32, #tpu.memory_space<vmem>>, vector<1x2x32xf32>
    %49 = vector.shape_cast %48 : vector<1x2x32xf32> to vector<2x32xf32>
    %50 = tpu.concatenate %49, %42 in 1 : vector<2x32xf32>, vector<2x32xf32> -> vector<2x64xf32>
    %51 = arith.truncf %50 : vector<2x64xf32> to vector<2x64xbf16>
    %cst_18 = arith.constant dense<0.000000e+00> : vector<2x128xf32>
    %52 = tpu.matmul %51, %4, %cst_18 {dimension_numbers = #tpu.dot_dimension_numbers<[1], [0], [0], [1], [0, 0, 1, 1], [], []>} : vector<2x64xbf16>, vector<64x128xbf16>, vector<2x128xf32> -> vector<2x128xf32>
    %53 = arith.addf %52, %8 : vector<2x128xf32>
    %54 = vector.extract_strided_slice %53 {offsets = [0, 0], sizes = [2, 32], strides = [1, 1]} : vector<2x128xf32> to vector<2x32xf32>
    %55 = arith.negf %54 : vector<2x32xf32>
    %56 = math.exp %55 : vector<2x32xf32>
    %cst_19 = arith.constant 1.000000e+00 : f32
    %57 = vector.broadcast %cst_19 : f32 to vector<2x32xf32>
    %58 = arith.addf %57, %56 : vector<2x32xf32>
    %59 = arith.divf %57, %58 : vector<2x32xf32>
    %60 = vector.extract_strided_slice %53 {offsets = [0, 32], sizes = [2, 32], strides = [1, 1]} : vector<2x128xf32> to vector<2x32xf32>
    %61 = arith.negf %60 : vector<2x32xf32>
    %62 = math.exp %61 : vector<2x32xf32>
    %cst_20 = arith.constant 1.000000e+00 : f32
    %63 = vector.broadcast %cst_20 : f32 to vector<2x32xf32>
    %64 = arith.addf %63, %62 : vector<2x32xf32>
    %65 = arith.divf %63, %64 : vector<2x32xf32>
    %66 = vector.extract_strided_slice %53 {offsets = [0, 64], sizes = [2, 32], strides = [1, 1]} : vector<2x128xf32> to vector<2x32xf32>
    %67 = math.tanh %66 : vector<2x32xf32>
    %68 = vector.extract_strided_slice %53 {offsets = [0, 96], sizes = [2, 32], strides = [1, 1]} : vector<2x128xf32> to vector<2x32xf32>
    %69 = arith.negf %68 : vector<2x32xf32>
    %70 = math.exp %69 : vector<2x32xf32>
    %cst_21 = arith.constant 1.000000e+00 : f32
    %71 = vector.broadcast %cst_21 : f32 to vector<2x32xf32>
    %72 = arith.addf %71, %70 : vector<2x32xf32>
    %73 = arith.divf %71, %72 : vector<2x32xf32>
    %74 = arith.mulf %65, %40 : vector<2x32xf32>
    %75 = arith.mulf %59, %67 : vector<2x32xf32>
    %76 = arith.addf %74, %75 : vector<2x32xf32>
    %77 = math.tanh %76 : vector<2x32xf32>
    %78 = arith.mulf %73, %77 : vector<2x32xf32>
    %79 = arith.index_cast %c1_i32 : i32 to index
    %c0_22 = arith.constant 0 : index
    %c0_23 = arith.constant 0 : index
    %80 = vector.load %arg6[%79, %c0_22, %c0_23] : memref<8x2x32xf32, #tpu.memory_space<vmem>>, vector<1x2x32xf32>
    %81 = vector.shape_cast %80 : vector<1x2x32xf32> to vector<2x32xf32>
    %82 = vector.shape_cast %78 : vector<2x32xf32> to vector<1x2x32xf32>
    tpu.vector_store %arg6[%79, %c0_22, %c0_23], %82 {strides = array<i32>} : memref<8x2x32xf32, #tpu.memory_space<vmem>>, vector<1x2x32xf32>,
    %c2_i32 = arith.constant 2 : i32
    %83 = arith.index_cast %c2_i32 : i32 to index
    %c0_24 = arith.constant 0 : index
    %c0_25 = arith.constant 0 : index
    %84 = vector.load %arg6[%83, %c0_24, %c0_25] : memref<8x2x32xf32, #tpu.memory_space<vmem>>, vector<1x2x32xf32>
    %85 = vector.shape_cast %84 : vector<1x2x32xf32> to vector<2x32xf32>
    %86 = tpu.concatenate %85, %78 in 1 : vector<2x32xf32>, vector<2x32xf32> -> vector<2x64xf32>
    %87 = arith.truncf %86 : vector<2x64xf32> to vector<2x64xbf16>
    %cst_26 = arith.constant dense<0.000000e+00> : vector<2x128xf32>
    %88 = tpu.matmul %87, %4, %cst_26 {dimension_numbers = #tpu.dot_dimension_numbers<[1], [0], [0], [1], [0, 0, 1, 1], [], []>} : vector<2x64xbf16>, vector<64x128xbf16>, vector<2x128xf32> -> vector<2x128xf32>
    %89 = arith.addf %88, %8 : vector<2x128xf32>
    %90 = vector.extract_strided_slice %89 {offsets = [0, 0], sizes = [2, 32], strides = [1, 1]} : vector<2x128xf32> to vector<2x32xf32>
    %91 = arith.negf %90 : vector<2x32xf32>
    %92 = math.exp %91 : vector<2x32xf32>
    %cst_27 = arith.constant 1.000000e+00 : f32
    %93 = vector.broadcast %cst_27 : f32 to vector<2x32xf32>
    %94 = arith.addf %93, %92 : vector<2x32xf32>
    %95 = arith.divf %93, %94 : vector<2x32xf32>
    %96 = vector.extract_strided_slice %89 {offsets = [0, 32], sizes = [2, 32], strides = [1, 1]} : vector<2x128xf32> to vector<2x32xf32>
    %97 = arith.negf %96 : vector<2x32xf32>
    %98 = math.exp %97 : vector<2x32xf32>
    %cst_28 = arith.constant 1.000000e+00 : f32
    %99 = vector.broadcast %cst_28 : f32 to vector<2x32xf32>
    %100 = arith.addf %99, %98 : vector<2x32xf32>
    %101 = arith.divf %99, %100 : vector<2x32xf32>
    %102 = vector.extract_strided_slice %89 {offsets = [0, 64], sizes = [2, 32], strides = [1, 1]} : vector<2x128xf32> to vector<2x32xf32>
    %103 = math.tanh %102 : vector<2x32xf32>
    %104 = vector.extract_strided_slice %89 {offsets = [0, 96], sizes = [2, 32], strides = [1, 1]} : vector<2x128xf32> to vector<2x32xf32>
    %105 = arith.negf %104 : vector<2x32xf32>
    %106 = math.exp %105 : vector<2x32xf32>
    %cst_29 = arith.constant 1.000000e+00 : f32
    %107 = vector.broadcast %cst_29 : f32 to vector<2x32xf32>
    %108 = arith.addf %107, %106 : vector<2x32xf32>
    %109 = arith.divf %107, %108 : vector<2x32xf32>
    %110 = arith.mulf %101, %76 : vector<2x32xf32>
    %111 = arith.mulf %95, %103 : vector<2x32xf32>
    %112 = arith.addf %110, %111 : vector<2x32xf32>
    %113 = math.tanh %112 : vector<2x32xf32>
    %114 = arith.mulf %109, %113 : vector<2x32xf32>
    %115 = arith.index_cast %c2_i32 : i32 to index
    %c0_30 = arith.constant 0 : index
    %c0_31 = arith.constant 0 : index
    %116 = vector.load %arg6[%115, %c0_30, %c0_31] : memref<8x2x32xf32, #tpu.memory_space<vmem>>, vector<1x2x32xf32>
    %117 = vector.shape_cast %116 : vector<1x2x32xf32> to vector<2x32xf32>
    %118 = vector.shape_cast %114 : vector<2x32xf32> to vector<1x2x32xf32>
    tpu.vector_store %arg6[%115, %c0_30, %c0_31], %118 {strides = array<i32>} : memref<8x2x32xf32, #tpu.memory_space<vmem>>, vector<1x2x32xf32>,
    %c3_i32 = arith.constant 3 : i32
    %119 = arith.index_cast %c3_i32 : i32 to index
    %c0_32 = arith.constant 0 : index
    %c0_33 = arith.constant 0 : index
    %120 = vector.load %arg6[%119, %c0_32, %c0_33] : memref<8x2x32xf32, #tpu.memory_space<vmem>>, vector<1x2x32xf32>
    %121 = vector.shape_cast %120 : vector<1x2x32xf32> to vector<2x32xf32>
    %122 = tpu.concatenate %121, %114 in 1 : vector<2x32xf32>, vector<2x32xf32> -> vector<2x64xf32>
    %123 = arith.truncf %122 : vector<2x64xf32> to vector<2x64xbf16>
    %cst_34 = arith.constant dense<0.000000e+00> : vector<2x128xf32>
    %124 = tpu.matmul %123, %4, %cst_34 {dimension_numbers = #tpu.dot_dimension_numbers<[1], [0], [0], [1], [0, 0, 1, 1], [], []>} : vector<2x64xbf16>, vector<64x128xbf16>, vector<2x128xf32> -> vector<2x128xf32>
    %125 = arith.addf %124, %8 : vector<2x128xf32>
    %126 = vector.extract_strided_slice %125 {offsets = [0, 0], sizes = [2, 32], strides = [1, 1]} : vector<2x128xf32> to vector<2x32xf32>
    %127 = arith.negf %126 : vector<2x32xf32>
    %128 = math.exp %127 : vector<2x32xf32>
    %cst_35 = arith.constant 1.000000e+00 : f32
    %129 = vector.broadcast %cst_35 : f32 to vector<2x32xf32>
    %130 = arith.addf %129, %128 : vector<2x32xf32>
    %131 = arith.divf %129, %130 : vector<2x32xf32>
    %132 = vector.extract_strided_slice %125 {offsets = [0, 32], sizes = [2, 32], strides = [1, 1]} : vector<2x128xf32> to vector<2x32xf32>
    %133 = arith.negf %132 : vector<2x32xf32>
    %134 = math.exp %133 : vector<2x32xf32>
    %cst_36 = arith.constant 1.000000e+00 : f32
    %135 = vector.broadcast %cst_36 : f32 to vector<2x32xf32>
    %136 = arith.addf %135, %134 : vector<2x32xf32>
    %137 = arith.divf %135, %136 : vector<2x32xf32>
    %138 = vector.extract_strided_slice %125 {offsets = [0, 64], sizes = [2, 32], strides = [1, 1]} : vector<2x128xf32> to vector<2x32xf32>
    %139 = math.tanh %138 : vector<2x32xf32>
    %140 = vector.extract_strided_slice %125 {offsets = [0, 96], sizes = [2, 32], strides = [1, 1]} : vector<2x128xf32> to vector<2x32xf32>
    %141 = arith.negf %140 : vector<2x32xf32>
    %142 = math.exp %141 : vector<2x32xf32>
    %cst_37 = arith.constant 1.000000e+00 : f32
    %143 = vector.broadcast %cst_37 : f32 to vector<2x32xf32>
    %144 = arith.addf %143, %142 : vector<2x32xf32>
    %145 = arith.divf %143, %144 : vector<2x32xf32>
    %146 = arith.mulf %137, %112 : vector<2x32xf32>
    %147 = arith.mulf %131, %139 : vector<2x32xf32>
    %148 = arith.addf %146, %147 : vector<2x32xf32>
    %149 = math.tanh %148 : vector<2x32xf32>
    %150 = arith.mulf %145, %149 : vector<2x32xf32>
    %151 = arith.index_cast %c3_i32 : i32 to index
    %c0_38 = arith.constant 0 : index
    %c0_39 = arith.constant 0 : index
    %152 = vector.load %arg6[%151, %c0_38, %c0_39] : memref<8x2x32xf32, #tpu.memory_space<vmem>>, vector<1x2x32xf32>
    %153 = vector.shape_cast %152 : vector<1x2x32xf32> to vector<2x32xf32>
    %154 = vector.shape_cast %150 : vector<2x32xf32> to vector<1x2x32xf32>
    tpu.vector_store %arg6[%151, %c0_38, %c0_39], %154 {strides = array<i32>} : memref<8x2x32xf32, #tpu.memory_space<vmem>>, vector<1x2x32xf32>,
    %c4_i32 = arith.constant 4 : i32
    %155 = arith.index_cast %c4_i32 : i32 to index
    %c0_40 = arith.constant 0 : index
    %c0_41 = arith.constant 0 : index
    %156 = vector.load %arg6[%155, %c0_40, %c0_41] : memref<8x2x32xf32, #tpu.memory_space<vmem>>, vector<1x2x32xf32>
    %157 = vector.shape_cast %156 : vector<1x2x32xf32> to vector<2x32xf32>
    %158 = tpu.concatenate %157, %150 in 1 : vector<2x32xf32>, vector<2x32xf32> -> vector<2x64xf32>
    %159 = arith.truncf %158 : vector<2x64xf32> to vector<2x64xbf16>
    %cst_42 = arith.constant dense<0.000000e+00> : vector<2x128xf32>
    %160 = tpu.matmul %159, %4, %cst_42 {dimension_numbers = #tpu.dot_dimension_numbers<[1], [0], [0], [1], [0, 0, 1, 1], [], []>} : vector<2x64xbf16>, vector<64x128xbf16>, vector<2x128xf32> -> vector<2x128xf32>
    %161 = arith.addf %160, %8 : vector<2x128xf32>
    %162 = vector.extract_strided_slice %161 {offsets = [0, 0], sizes = [2, 32], strides = [1, 1]} : vector<2x128xf32> to vector<2x32xf32>
    %163 = arith.negf %162 : vector<2x32xf32>
    %164 = math.exp %163 : vector<2x32xf32>
    %cst_43 = arith.constant 1.000000e+00 : f32
    %165 = vector.broadcast %cst_43 : f32 to vector<2x32xf32>
    %166 = arith.addf %165, %164 : vector<2x32xf32>
    %167 = arith.divf %165, %166 : vector<2x32xf32>
    %168 = vector.extract_strided_slice %161 {offsets = [0, 32], sizes = [2, 32], strides = [1, 1]} : vector<2x128xf32> to vector<2x32xf32>
    %169 = arith.negf %168 : vector<2x32xf32>
    %170 = math.exp %169 : vector<2x32xf32>
    %cst_44 = arith.constant 1.000000e+00 : f32
    %171 = vector.broadcast %cst_44 : f32 to vector<2x32xf32>
    %172 = arith.addf %171, %170 : vector<2x32xf32>
    %173 = arith.divf %171, %172 : vector<2x32xf32>
    %174 = vector.extract_strided_slice %161 {offsets = [0, 64], sizes = [2, 32], strides = [1, 1]} : vector<2x128xf32> to vector<2x32xf32>
    %175 = math.tanh %174 : vector<2x32xf32>
    %176 = vector.extract_strided_slice %161 {offsets = [0, 96], sizes = [2, 32], strides = [1, 1]} : vector<2x128xf32> to vector<2x32xf32>
    %177 = arith.negf %176 : vector<2x32xf32>
    %178 = math.exp %177 : vector<2x32xf32>
    %cst_45 = arith.constant 1.000000e+00 : f32
    %179 = vector.broadcast %cst_45 : f32 to vector<2x32xf32>
    %180 = arith.addf %179, %178 : vector<2x32xf32>
    %181 = arith.divf %179, %180 : vector<2x32xf32>
    %182 = arith.mulf %173, %148 : vector<2x32xf32>
    %183 = arith.mulf %167, %175 : vector<2x32xf32>
    %184 = arith.addf %182, %183 : vector<2x32xf32>
    %185 = math.tanh %184 : vector<2x32xf32>
    %186 = arith.mulf %181, %185 : vector<2x32xf32>
    %187 = arith.index_cast %c4_i32 : i32 to index
    %c0_46 = arith.constant 0 : index
    %c0_47 = arith.constant 0 : index
    %188 = vector.load %arg6[%187, %c0_46, %c0_47] : memref<8x2x32xf32, #tpu.memory_space<vmem>>, vector<1x2x32xf32>
    %189 = vector.shape_cast %188 : vector<1x2x32xf32> to vector<2x32xf32>
    %190 = vector.shape_cast %186 : vector<2x32xf32> to vector<1x2x32xf32>
    tpu.vector_store %arg6[%187, %c0_46, %c0_47], %190 {strides = array<i32>} : memref<8x2x32xf32, #tpu.memory_space<vmem>>, vector<1x2x32xf32>,
    %c5_i32 = arith.constant 5 : i32
    %191 = arith.index_cast %c5_i32 : i32 to index
    %c0_48 = arith.constant 0 : index
    %c0_49 = arith.constant 0 : index
    %192 = vector.load %arg6[%191, %c0_48, %c0_49] : memref<8x2x32xf32, #tpu.memory_space<vmem>>, vector<1x2x32xf32>
    %193 = vector.shape_cast %192 : vector<1x2x32xf32> to vector<2x32xf32>
    %194 = tpu.concatenate %193, %186 in 1 : vector<2x32xf32>, vector<2x32xf32> -> vector<2x64xf32>
    %195 = arith.truncf %194 : vector<2x64xf32> to vector<2x64xbf16>
    %cst_50 = arith.constant dense<0.000000e+00> : vector<2x128xf32>
    %196 = tpu.matmul %195, %4, %cst_50 {dimension_numbers = #tpu.dot_dimension_numbers<[1], [0], [0], [1], [0, 0, 1, 1], [], []>} : vector<2x64xbf16>, vector<64x128xbf16>, vector<2x128xf32> -> vector<2x128xf32>
    %197 = arith.addf %196, %8 : vector<2x128xf32>
    %198 = vector.extract_strided_slice %197 {offsets = [0, 0], sizes = [2, 32], strides = [1, 1]} : vector<2x128xf32> to vector<2x32xf32>
    %199 = arith.negf %198 : vector<2x32xf32>
    %200 = math.exp %199 : vector<2x32xf32>
    %cst_51 = arith.constant 1.000000e+00 : f32
    %201 = vector.broadcast %cst_51 : f32 to vector<2x32xf32>
    %202 = arith.addf %201, %200 : vector<2x32xf32>
    %203 = arith.divf %201, %202 : vector<2x32xf32>
    %204 = vector.extract_strided_slice %197 {offsets = [0, 32], sizes = [2, 32], strides = [1, 1]} : vector<2x128xf32> to vector<2x32xf32>
    %205 = arith.negf %204 : vector<2x32xf32>
    %206 = math.exp %205 : vector<2x32xf32>
    %cst_52 = arith.constant 1.000000e+00 : f32
    %207 = vector.broadcast %cst_52 : f32 to vector<2x32xf32>
    %208 = arith.addf %207, %206 : vector<2x32xf32>
    %209 = arith.divf %207, %208 : vector<2x32xf32>
    %210 = vector.extract_strided_slice %197 {offsets = [0, 64], sizes = [2, 32], strides = [1, 1]} : vector<2x128xf32> to vector<2x32xf32>
    %211 = math.tanh %210 : vector<2x32xf32>
    %212 = vector.extract_strided_slice %197 {offsets = [0, 96], sizes = [2, 32], strides = [1, 1]} : vector<2x128xf32> to vector<2x32xf32>
    %213 = arith.negf %212 : vector<2x32xf32>
    %214 = math.exp %213 : vector<2x32xf32>
    %cst_53 = arith.constant 1.000000e+00 : f32
    %215 = vector.broadcast %cst_53 : f32 to vector<2x32xf32>
    %216 = arith.addf %215, %214 : vector<2x32xf32>
    %217 = arith.divf %215, %216 : vector<2x32xf32>
    %218 = arith.mulf %209, %184 : vector<2x32xf32>
    %219 = arith.mulf %203, %211 : vector<2x32xf32>
    %220 = arith.addf %218, %219 : vector<2x32xf32>
    %221 = math.tanh %220 : vector<2x32xf32>
    %222 = arith.mulf %217, %221 : vector<2x32xf32>
    %223 = arith.index_cast %c5_i32 : i32 to index
    %c0_54 = arith.constant 0 : index
    %c0_55 = arith.constant 0 : index
    %224 = vector.load %arg6[%223, %c0_54, %c0_55] : memref<8x2x32xf32, #tpu.memory_space<vmem>>, vector<1x2x32xf32>
    %225 = vector.shape_cast %224 : vector<1x2x32xf32> to vector<2x32xf32>
    %226 = vector.shape_cast %222 : vector<2x32xf32> to vector<1x2x32xf32>
    tpu.vector_store %arg6[%223, %c0_54, %c0_55], %226 {strides = array<i32>} : memref<8x2x32xf32, #tpu.memory_space<vmem>>, vector<1x2x32xf32>,
    %c6_i32 = arith.constant 6 : i32
    %227 = arith.index_cast %c6_i32 : i32 to index
    %c0_56 = arith.constant 0 : index
    %c0_57 = arith.constant 0 : index
    %228 = vector.load %arg6[%227, %c0_56, %c0_57] : memref<8x2x32xf32, #tpu.memory_space<vmem>>, vector<1x2x32xf32>
    %229 = vector.shape_cast %228 : vector<1x2x32xf32> to vector<2x32xf32>
    %230 = tpu.concatenate %229, %222 in 1 : vector<2x32xf32>, vector<2x32xf32> -> vector<2x64xf32>
    %231 = arith.truncf %230 : vector<2x64xf32> to vector<2x64xbf16>
    %cst_58 = arith.constant dense<0.000000e+00> : vector<2x128xf32>
    %232 = tpu.matmul %231, %4, %cst_58 {dimension_numbers = #tpu.dot_dimension_numbers<[1], [0], [0], [1], [0, 0, 1, 1], [], []>} : vector<2x64xbf16>, vector<64x128xbf16>, vector<2x128xf32> -> vector<2x128xf32>
    %233 = arith.addf %232, %8 : vector<2x128xf32>
    %234 = vector.extract_strided_slice %233 {offsets = [0, 0], sizes = [2, 32], strides = [1, 1]} : vector<2x128xf32> to vector<2x32xf32>
    %235 = arith.negf %234 : vector<2x32xf32>
    %236 = math.exp %235 : vector<2x32xf32>
    %cst_59 = arith.constant 1.000000e+00 : f32
    %237 = vector.broadcast %cst_59 : f32 to vector<2x32xf32>
    %238 = arith.addf %237, %236 : vector<2x32xf32>
    %239 = arith.divf %237, %238 : vector<2x32xf32>
    %240 = vector.extract_strided_slice %233 {offsets = [0, 32], sizes = [2, 32], strides = [1, 1]} : vector<2x128xf32> to vector<2x32xf32>
    %241 = arith.negf %240 : vector<2x32xf32>
    %242 = math.exp %241 : vector<2x32xf32>
    %cst_60 = arith.constant 1.000000e+00 : f32
    %243 = vector.broadcast %cst_60 : f32 to vector<2x32xf32>
    %244 = arith.addf %243, %242 : vector<2x32xf32>
    %245 = arith.divf %243, %244 : vector<2x32xf32>
    %246 = vector.extract_strided_slice %233 {offsets = [0, 64], sizes = [2, 32], strides = [1, 1]} : vector<2x128xf32> to vector<2x32xf32>
    %247 = math.tanh %246 : vector<2x32xf32>
    %248 = vector.extract_strided_slice %233 {offsets = [0, 96], sizes = [2, 32], strides = [1, 1]} : vector<2x128xf32> to vector<2x32xf32>
    %249 = arith.negf %248 : vector<2x32xf32>
    %250 = math.exp %249 : vector<2x32xf32>
    %cst_61 = arith.constant 1.000000e+00 : f32
    %251 = vector.broadcast %cst_61 : f32 to vector<2x32xf32>
    %252 = arith.addf %251, %250 : vector<2x32xf32>
    %253 = arith.divf %251, %252 : vector<2x32xf32>
    %254 = arith.mulf %245, %220 : vector<2x32xf32>
    %255 = arith.mulf %239, %247 : vector<2x32xf32>
    %256 = arith.addf %254, %255 : vector<2x32xf32>
    %257 = math.tanh %256 : vector<2x32xf32>
    %258 = arith.mulf %253, %257 : vector<2x32xf32>
    %259 = arith.index_cast %c6_i32 : i32 to index
    %c0_62 = arith.constant 0 : index
    %c0_63 = arith.constant 0 : index
    %260 = vector.load %arg6[%259, %c0_62, %c0_63] : memref<8x2x32xf32, #tpu.memory_space<vmem>>, vector<1x2x32xf32>
    %261 = vector.shape_cast %260 : vector<1x2x32xf32> to vector<2x32xf32>
    %262 = vector.shape_cast %258 : vector<2x32xf32> to vector<1x2x32xf32>
    tpu.vector_store %arg6[%259, %c0_62, %c0_63], %262 {strides = array<i32>} : memref<8x2x32xf32, #tpu.memory_space<vmem>>, vector<1x2x32xf32>,
    %c7_i32 = arith.constant 7 : i32
    %263 = arith.index_cast %c7_i32 : i32 to index
    %c0_64 = arith.constant 0 : index
    %c0_65 = arith.constant 0 : index
    %264 = vector.load %arg6[%263, %c0_64, %c0_65] : memref<8x2x32xf32, #tpu.memory_space<vmem>>, vector<1x2x32xf32>
    %265 = vector.shape_cast %264 : vector<1x2x32xf32> to vector<2x32xf32>
    %266 = tpu.concatenate %265, %258 in 1 : vector<2x32xf32>, vector<2x32xf32> -> vector<2x64xf32>
    %267 = arith.truncf %266 : vector<2x64xf32> to vector<2x64xbf16>
    %cst_66 = arith.constant dense<0.000000e+00> : vector<2x128xf32>
    %268 = tpu.matmul %267, %4, %cst_66 {dimension_numbers = #tpu.dot_dimension_numbers<[1], [0], [0], [1], [0, 0, 1, 1], [], []>} : vector<2x64xbf16>, vector<64x128xbf16>, vector<2x128xf32> -> vector<2x128xf32>
    %269 = arith.addf %268, %8 : vector<2x128xf32>
    %270 = vector.extract_strided_slice %269 {offsets = [0, 0], sizes = [2, 32], strides = [1, 1]} : vector<2x128xf32> to vector<2x32xf32>
    %271 = arith.negf %270 : vector<2x32xf32>
    %272 = math.exp %271 : vector<2x32xf32>
    %cst_67 = arith.constant 1.000000e+00 : f32
    %273 = vector.broadcast %cst_67 : f32 to vector<2x32xf32>
    %274 = arith.addf %273, %272 : vector<2x32xf32>
    %275 = arith.divf %273, %274 : vector<2x32xf32>
    %276 = vector.extract_strided_slice %269 {offsets = [0, 32], sizes = [2, 32], strides = [1, 1]} : vector<2x128xf32> to vector<2x32xf32>
    %277 = arith.negf %276 : vector<2x32xf32>
    %278 = math.exp %277 : vector<2x32xf32>
    %cst_68 = arith.constant 1.000000e+00 : f32
    %279 = vector.broadcast %cst_68 : f32 to vector<2x32xf32>
    %280 = arith.addf %279, %278 : vector<2x32xf32>
    %281 = arith.divf %279, %280 : vector<2x32xf32>
    %282 = vector.extract_strided_slice %269 {offsets = [0, 64], sizes = [2, 32], strides = [1, 1]} : vector<2x128xf32> to vector<2x32xf32>
    %283 = math.tanh %282 : vector<2x32xf32>
    %284 = vector.extract_strided_slice %269 {offsets = [0, 96], sizes = [2, 32], strides = [1, 1]} : vector<2x128xf32> to vector<2x32xf32>
    %285 = arith.negf %284 : vector<2x32xf32>
    %286 = math.exp %285 : vector<2x32xf32>
    %cst_69 = arith.constant 1.000000e+00 : f32
    %287 = vector.broadcast %cst_69 : f32 to vector<2x32xf32>
    %288 = arith.addf %287, %286 : vector<2x32xf32>
    %289 = arith.divf %287, %288 : vector<2x32xf32>
    %290 = arith.mulf %281, %256 : vector<2x32xf32>
    %291 = arith.mulf %275, %283 : vector<2x32xf32>
    %292 = arith.addf %290, %291 : vector<2x32xf32>
    %293 = math.tanh %292 : vector<2x32xf32>
    %294 = arith.mulf %289, %293 : vector<2x32xf32>
    %295 = arith.index_cast %c7_i32 : i32 to index
    %c0_70 = arith.constant 0 : index
    %c0_71 = arith.constant 0 : index
    %296 = vector.load %arg6[%295, %c0_70, %c0_71] : memref<8x2x32xf32, #tpu.memory_space<vmem>>, vector<1x2x32xf32>
    %297 = vector.shape_cast %296 : vector<1x2x32xf32> to vector<2x32xf32>
    %298 = vector.shape_cast %294 : vector<2x32xf32> to vector<1x2x32xf32>
    tpu.vector_store %arg6[%295, %c0_70, %c0_71], %298 {strides = array<i32>} : memref<8x2x32xf32, #tpu.memory_space<vmem>>, vector<1x2x32xf32>,
    %c8_i32 = arith.constant 8 : i32
    %c0_72 = arith.constant 0 : index
    %c0_73 = arith.constant 0 : index
    %c0_74 = arith.constant 0 : index
    %299 = vector.load %arg4[%c0_72, %c0_73, %c0_74] : memref<1x2x32xf32, #tpu.memory_space<vmem>>, vector<1x2x32xf32>
    %300 = vector.shape_cast %299 : vector<1x2x32xf32> to vector<2x32xf32>
    %301 = vector.shape_cast %294 : vector<2x32xf32> to vector<1x2x32xf32>
    tpu.vector_store %arg4[%c0_72, %c0_73, %c0_74], %301 {strides = array<i32>} : memref<1x2x32xf32, #tpu.memory_space<vmem>>, vector<1x2x32xf32>,
    %c0_75 = arith.constant 0 : index
    %c0_76 = arith.constant 0 : index
    %c0_77 = arith.constant 0 : index
    %302 = vector.load %arg5[%c0_75, %c0_76, %c0_77] : memref<1x2x32xf32, #tpu.memory_space<vmem>>, vector<1x2x32xf32>
    %303 = vector.shape_cast %302 : vector<1x2x32xf32> to vector<2x32xf32>
    %304 = vector.shape_cast %292 : vector<2x32xf32> to vector<1x2x32xf32>
    tpu.vector_store %arg5[%c0_75, %c0_76, %c0_77], %304 {strides = array<i32>} : memref<1x2x32xf32, #tpu.memory_space<vmem>>, vector<1x2x32xf32>,
    return
  }
  func.func @transform_0(%arg0: i32) -> (i32, i32, i32) {
    %c0_i32 = arith.constant 0 : i32
    %c0_i32_0 = arith.constant 0 : i32
    %c0_i32_1 = arith.constant 0 : i32
    %c0_i32_2 = arith.constant 0 : i32
    return %c0_i32, %c0_i32_0, %c0_i32_1 : i32, i32, i32
  }
  func.func @transform_1(%arg0: i32) -> (i32, i32, i32) {
    %c0_i32 = arith.constant 0 : i32
    %c0_i32_0 = arith.constant 0 : i32
    %c0_i32_1 = arith.constant 0 : i32
    return %arg0, %c0_i32, %c0_i32_0 : i32, i32, i32
  }
  func.func @transform_2(%arg0: i32) -> (i32, i32, i32) {
    %c0_i32 = arith.constant 0 : i32
    %c0_i32_0 = arith.constant 0 : i32
    %c0_i32_1 = arith.constant 0 : i32
    return %arg0, %c0_i32, %c0_i32_0 : i32, i32, i32
  }
  func.func @transform_3(%arg0: i32) -> (i32, i32, i32) {
    %c0_i32 = arith.constant 0 : i32
    %c0_i32_0 = arith.constant 0 : i32
    %c0_i32_1 = arith.constant 0 : i32
    return %arg0, %c0_i32, %c0_i32_0 : i32, i32, i32
  }
  func.func @transform_4(%arg0: i32) -> (i32, i32, i32) {
    %c0_i32 = arith.constant 0 : i32
    %c0_i32_0 = arith.constant 0 : i32
    %c0_i32_1 = arith.constant 0 : i32
    return %arg0, %c0_i32, %c0_i32_0 : i32, i32, i32
  }
}

</mosaic_0001>

<bundles_post_ra>
// kernel: encoder_forward.1
= control target key start
LH: loop header
LB: loop body
LE: loop exit
PB: predicated region body
PF: predicated region fallthrough
CT: control target
= control target key end

     0   :  { %10 = vsyncpa [#allocation4], 0  ;;  %s1485_s0 = inlined_call_operand.vmem [shape: f32[8,2,32], index: 0, kind: input, shape index: {}]   ;;  %s1486_s1 = inlined_call_operand.vmem [shape: bf16[2,64,128], index: 1, kind: input, shape index: {}]   ;;  %s1487_s2 = inlined_call_operand.vmem [shape: f32[2,1,128], index: 2, kind: input, shape index: {}]   ;;  %s1488_s3 = inlined_call_operand.hbm [shape: f32[2,2,32], index: 3, kind: output, shape index: {0}]   ;;  %s1489_s4 = inlined_call_operand.hbm [shape: f32[2,2,32], index: 4, kind: output, shape index: {1}]  }
   0x1   :  { %12 = vsyncpa [#allocation4 + $0x1], 0 }
   0x2   :  { %13 = vsyncpa [#allocation6], 0 }
   0x3   :  { %15 = vsyncpa [#allocation6 + $0x1], 0  ;;  %s1228_s15 = smov 0   ;;  %s1230_s16 = smov 0  }
   0x4   :  { %s1232_s17 = smov 0   ;;  %s1234_s18 = smov 0  }
   0x5 LB: > { %s1249_s19 = sadd.s32 4294967295, %s1198_s18   ;;  %s940_s20 = sadd.s32 4294967294, %s1198_s18   ;;  %s1198_s18 = sphi %s1234_s18, %s1495_s18   ;;  %s1194_s17 = sphi %s1232_s17, %s1494_s17   ;;  %s1190_s16 = sphi %s1230_s16, %s1493_s16   ;;  %s1186_s15 = sphi %s1228_s15, %s1492_s15  }
   0x6   : > { %s1253_s21 = sadd.s32 1, %s1198_s18   ;;  %s101_s22 = sadd.s32 1, %s1194_s17 }
   0x7   : > { %s98_s23 = ssub.s32 %s1198_s18, %s1253_s21  ;;  %p111_p0 = scmp.ne.s32.totalorder %s1194_s17, %s1190_s16 }
   0x8   : > { %p99_p1 = scmp.eq.s32.totalorder %s98_s23, 0  ;;  %p112_p2 = scmp.eq.s32.totalorder %s1249_s19, 1 }
   0x9   : > { %p117_p3 = scmp.ne.s32.totalorder %s1190_s16, %s1186_s15  ;;  %p118_p4 = scmp.eq.s32.totalorder %s940_s20, 1 }
   0xa   : > { %s1264_s24 = scalar_select %p99_p1, %s1194_s17, %s101_s22  }
   0xb   : > { %p1266_p5 = por %p112_p2, %p111_p0  ;;  %p1270_p6 = por %p118_p4, %p117_p3 }
   0xc   : > { %p943_p7 = scmp.ge.s32.totalorder %s1198_s18, 1  ;;  %p179_p8 = scmp.lt.s32.totalorder %s1198_s18, 3 }
   0xe   : > { %p180_p9 = pnand %p943_p7, %p179_p8 }
   0xf   : > { %s1277_s27 = sand.u32 (!%p180_p9), 1, %s1190_s16   ;;  %p213_p10 = scmp.lt.s32.totalorder (!%p180_p9), %s1249_s19, 1 }
  0x10   : > { %183 = sbr.rel (%p180_p9) target bundleno = 4730 (0x127a), region = 32  ;;  %s944_s28 = sshll.u32 (!%p180_p9), %s1277_s27, 1 }
  0x11   : > { %s1294_s11 = scalar_lea.vmem (!%p180_p9), [#allocation3], %s944_s28  ;;  %s1296_s12 = scalar_lea.vmem (!%p180_p9), [#allocation5], %s944_s28 }
  0x12   : > { %p948_p11 = scmp.ne.s32.totalorder (!%p180_p9), %s1249_s19, 0 }
  0x15   : > { %s1282_s29 = scalar_select %p213_p10, %s1249_s19, 1 }
  0x16   : > { %225 = sbr.rel (%p948_p11) target bundleno = 36 (0x24), region = 36 }
  0x17   : > { %s987_s30 = sshll.u32 %s1282_s29, 5  ;;  %s220_s7 = scalar_lea.vmem %s1487_s2, %s1282_s29 }
  0x18   : > { %s1292_s10 = scalar_lea.vmem %s1486_s1, %s987_s30 }
  0x1b   : > { %v226_v0 = vld [vmem:[%s1485_s0] sm:$0x3]  ;;  %vm234_vm0 = vcmask 254976   ;;  %v227_v1 = vld [vmem:[%s1485_s0 + $0x2] sm:$0x3] }
  0x1c   : > { %235 = vst.msk [vmem:[#allocation2] sm:$0x3] %vm234_vm0, %v226_v0  ;;  %v228_v2 = vld [vmem:[%s1485_s0 + $0x4] sm:$0x3]  ;;  %v229_v3 = vld [vmem:[%s1485_s0 + $0x6] sm:$0x3] }
  0x1d   : > { %236 = vst.msk [vmem:[#allocation2 + $0x2] sm:$0x3] %vm234_vm0, %v227_v1  ;;  %v230_v4 = vld [vmem:[%s1485_s0 + $0x8] sm:$0x3]  ;;  %v231_v5 = vld [vmem:[%s1485_s0 + $0xa] sm:$0x3] }
  0x1e   : > { %237 = vst.msk [vmem:[#allocation2 + $0x4] sm:$0x3] %vm234_vm0, %v228_v2  ;;  %v232_v6 = vld [vmem:[%s1485_s0 + $0xc] sm:$0x3]  ;;  %v233_v7 = vld [vmem:[%s1485_s0 + $0xe] sm:$0x3] }
  0x1f   : > { %238 = vst.msk [vmem:[#allocation2 + $0x6] sm:$0x3] %vm234_vm0, %v229_v3 }
  0x20   : > { %239 = vst.msk [vmem:[#allocation2 + $0x8] sm:$0x3] %vm234_vm0, %v230_v4 }
  0x21   : > { %240 = vst.msk [vmem:[#allocation2 + $0xa] sm:$0x3] %vm234_vm0, %v231_v5 }
  0x22   : > { %241 = vst.msk [vmem:[#allocation2 + $0xc] sm:$0x3] %vm234_vm0, %v232_v6 }
  0x23   : > { %242 = vst.msk [vmem:[#allocation2 + $0xe] sm:$0x3] %vm234_vm0, %v233_v7 }
  0x24 PF: > { %v991_v8 = vld [vmem:[%s1292_s10 + $0x18] sm:$0xff]  ;;  %v990_v9 = vld [vmem:[%s1292_s10 + $0x10] sm:$0xff]  ;;  %v989_v10 = vld [vmem:[%s1292_s10 + $0x8] sm:$0xff]  ;;  %vm256_vm1 = vcmask 261120   ;;  %vm283_vm2 = vcmask 523264   ;;  %s1200_s5 = smov 64  }
  0x25   : > { %291 = vmatpush.bf16.msra.mxu0 %v991_v8  ;;  %357 = vmatpush.bf16.msra.mxu1 %v991_v8  ;;  %v255_v11 = vld [vmem:[#allocation2] sm:$0x3]  ;;  %s1201_s29 = smov 32   ;;  %v344_v41 = vld [vmem:[#allocation2 + $0x2] sm:$0x3]  ;;  %s983_s28 = sshll.u32 %s1249_s19, 1 }
  0x26   : > { %422 = vmatpush.bf16.msra.mxu2 %v991_v8  ;;  %487 = vmatpush.bf16.msra.mxu3 %v991_v8  ;;  %v988_v12 = vld [vmem:[%s1292_s10] sm:$0xff]  ;;  %v257_v13 = vsel %vm256_vm1, %v255_v11, 0.0  ;;  %s834_s9 = scalar_lea.hbm %s1489_s4, %s983_s28  ;;  %s836_s13 = sshll.u32 %s1296_s12, 4  ;;  %s837_s13 = int_to_ptr.vmem [resolvable:$true] %s836_s13 }
  0x27   : > { %v258_v14 = vpack.c.bf16 %v257_v13, %v257_v13  ;;  %v1334_v15 = vld [vmem:[%s220_s7] ss:$0 sm:$0xff]  ;;  %v409_v6 = vld [vmem:[#allocation2 + $0x4] sm:$0x3]  ;;  %s1202_s7 = smov 96   ;;  %s838_s14 = sshll.u32 %s834_s9, 4  ;;  %s839_s14 = int_to_ptr.hbm [resolvable:$true] %s838_s14 }
  0x28   : > { %s810_s20 = scalar_lea.sflag [#allocation6], %s1277_s27  ;;  %s1118_s22 = sshra.s32 %s839_s14, 4  ;;  %s1119_s22 = int_to_ptr.hbm [resolvable:$true] %s1118_s22 }
  0x29   : > { %292 = vmatpush.bf16.msra.mxu0 %v990_v9  ;;  %358 = vmatpush.bf16.msra.mxu1 %v990_v9  ;;  %s1120_s23 = scalar_lea.hbm %s1119_s22, 2  ;;  %p1125_p1 = scmp.lt.s32.totalorder %s1119_s22, %s1489_s4 }
  0x2a   : > { %423 = vmatpush.bf16.msra.mxu2 %v990_v9  ;;  %488 = vmatpush.bf16.msra.mxu3 %v990_v9  ;;  %p1121_p12 = scmp.ne.s32.totalorder %s1119_s22, %s1120_s23 }
  0x2c   : > { %p1122_p13 = pnand %p1121_p12, %p1266_p5 }
  0x2d   : > { %293 = vmatpush.bf16.msra.mxu0 %v989_v10  ;;  %359 = vmatpush.bf16.msra.mxu1 %v989_v10 }
  0x2e   : > { %424 = vmatpush.bf16.msra.mxu2 %v989_v10  ;;  %489 = vmatpush.bf16.msra.mxu3 %v989_v10  ;;  %p1123_p0 = pneg %p1122_p13 }
  0x31   : > { %294 = vmatpush.bf16.msra.mxu0 %v988_v12  ;;  %360 = vmatpush.bf16.msra.mxu1 %v988_v12 }
  0x32   : > { %425 = vmatpush.bf16.msra.mxu2 %v988_v12  ;;  %490 = vmatpush.bf16.msra.mxu3 %v988_v12 }
  0x34   : > { %965 = vmatmul.msk.bf16.vlgmr.msra.gmra.mxu0 %vm283_vm2, %v258_v14 }
  0x35   : > { %552 = vmatpush.bf16.msrb.mxu0 %v991_v8  ;;  %617 = vmatpush.bf16.msrb.mxu1 %v991_v8 }
  0x36   : > { %682 = vmatpush.bf16.msrb.mxu2 %v991_v8  ;;  %747 = vmatpush.bf16.msrb.mxu3 %v991_v8 }
  0x39   : > { %553 = vmatpush.bf16.msrb.mxu0 %v990_v9  ;;  %618 = vmatpush.bf16.msrb.mxu1 %v990_v9 }
  0x3a   : > { %683 = vmatpush.bf16.msrb.mxu2 %v990_v9  ;;  %748 = vmatpush.bf16.msrb.mxu3 %v990_v9 }
  0x3d   : > { %554 = vmatpush.bf16.msrb.mxu0 %v989_v10  ;;  %619 = vmatpush.bf16.msrb.mxu1 %v989_v10 }
  0x3e   : > { %684 = vmatpush.bf16.msrb.mxu2 %v989_v10  ;;  %749 = vmatpush.bf16.msrb.mxu3 %v989_v10 }
  0x41   : > { %555 = vmatpush.bf16.msrb.mxu0 %v988_v12  ;;  %620 = vmatpush.bf16.msrb.mxu1 %v988_v12 }
  0x42   : > { %685 = vmatpush.bf16.msrb.mxu2 %v988_v12  ;;  %750 = vmatpush.bf16.msrb.mxu3 %v988_v12 }
  0xb1   : > { %v296_v16 = vpop.f32.mrf.mxu0 }
  0xb2   : > { %v297_v17 = vadd.f32 %v1334_v15, %v296_v16 }
  0xb4   : > { %1040 = vtanh.f32 %v297_v17  ;;  %v966_v20 = vmul.f32 -1.442695, %v297_v17 }
  0xb6   : > { %1042 = vpow2.f32 %v966_v20 }
  0xb9   : > { %v298_v18 = vpop.f32.mrf.mxu0 }
  0xba   : > { %v1041_v19 = vpop.eup %1040 }
  0xbb   : > { %322 = vrot.lane.b32.xlu0 %v1041_v19, %s1200_s5 }
  0xbc   : > { %v1043_v21 = vpop.eup %1042 }
  0xbd   : > { %v303_v22 = vadd.f32 1.0, %v1043_v21 }
  0xbf   : > { %1044 = vrcp.f32 %v303_v22  ;;  %v315_v28 = vand.u32 2147483648, %v303_v22  ;;  %vm309_vm4 = vweird.f32 %v303_v22  ;;  %v313_v29 = vand.u32 2147483647, %v303_v22 }
  0xc1   : > { %v316_v31 = vor.u32 1.1754944e-38, %v315_v28  ;;  %vm314_vm6 = vcmp.eq.f32.partialorder %v313_v29, 8.507059e+37 }
  0xc5   : > { %v1045_v23 = vpop.eup %1044 }
  0xc6   : > { %v305_v24 = vmul.f32 %v1045_v23, %v303_v22  ;;  %vm310_vm3 = vweird.f32 %v1045_v23 }
  0xc7   : > { %vm311_vm5 = vmor %vm309_vm4, %vm310_vm3 }
  0xc8   : > { %v306_v25 = vsub.f32 1.0, %v305_v24 }
  0xca   : > { %v307_v26 = vmul.f32 %v1045_v23, %v306_v25 }
  0xcc   : > { %v308_v27 = vadd.f32 %v1045_v23, %v307_v26 }
  0xce   : > { %v312_v30 = vsel %vm311_vm5, %v1045_v23, %v308_v27 }
  0xcf   : > { %v317_v33 = vsel %vm314_vm6, %v316_v31, %v312_v30 }
  0xd0   : > { %v320_v35 = vmul.f32 0.0, %v317_v33 }
 0x12d   : > { %v323_v32 = vpop.permute.xlu0 %322 }
 0x12e   : > { %v325_v34 = vmul.f32 %v323_v32, %v317_v33 }
 0x130   : > { %327 = vrot.lane.b32.xlu0 %v325_v34, %s1201_s29 }
 0x1a2   : > { %v328_v36 = vpop.permute.xlu0 %327 }
 0x1a3   : > { %v330_v37 = vadd.f32 %v328_v36, %v320_v35  ;;  %v474_v36 = vld [vmem:[#allocation2 + $0x6] sm:$0x3] }
 0x1a5   : > { %1046 = vtanh.f32 %v330_v37 }
 0x1ab   : > { %v1047_v38 = vpop.eup %1046 }
 0x1ac   : > { %333 = vrot.lane.b32.xlu1 %v1047_v38, %s1200_s5 }
 0x21e   : > { %v334_v39 = vpop.permute.xlu1 %333 }
 0x21f   : > { %v1340_v40 = vmul.f32 %v334_v39, %v317_v33 }
 0x221   : > { %345 = vrot.lane.b32.xlu1 %v1340_v40, %s1200_s5 }
 0x293   : > { %v346_v42 = vpop.permute.xlu1 %345 }
 0x294   : > { %v348_v43 = vsel %vm256_vm1, %v344_v41, %v346_v42 }
 0x295   : > { %v349_v44 = vpack.c.bf16 %v348_v43, %v348_v43 }
 0x297   : > { %967 = vmatmul.msk.bf16.vlgmr.msra.gmra.mxu1 %vm283_vm2, %v349_v44 }
 0x314   : > { %v362_v45 = vpop.f32.mrf.mxu1 }
 0x315   : > { %v363_v46 = vadd.f32 %v1334_v15, %v362_v45 }
 0x317   : > { %1048 = vtanh.f32 %v363_v46  ;;  %v968_v49 = vmul.f32 -1.442695, %v363_v46 }
 0x319   : > { %1050 = vpow2.f32 %v968_v49 }
 0x31c   : > { %v364_v47 = vpop.f32.mrf.mxu1 }
 0x31d   : > { %v1049_v48 = vpop.eup %1048 }
 0x31e   : > { %388 = vrot.lane.b32.xlu2 %v1049_v48, %s1200_s5 }
 0x31f   : > { %v1051_v50 = vpop.eup %1050 }
 0x320   : > { %v369_v51 = vadd.f32 1.0, %v1051_v50 }
 0x322   : > { %1052 = vrcp.f32 %v369_v51  ;;  %v381_v57 = vand.u32 2147483648, %v369_v51  ;;  %vm375_vm8 = vweird.f32 %v369_v51  ;;  %v379_v58 = vand.u32 2147483647, %v369_v51 }
 0x324   : > { %v382_v60 = vor.u32 1.1754944e-38, %v381_v57  ;;  %vm380_vm10 = vcmp.eq.f32.partialorder %v379_v58, 8.507059e+37 }
 0x328   : > { %v1053_v52 = vpop.eup %1052 }
 0x329   : > { %v371_v53 = vmul.f32 %v1053_v52, %v369_v51  ;;  %vm376_vm7 = vweird.f32 %v1053_v52 }
 0x32a   : > { %vm377_vm9 = vmor %vm375_vm8, %vm376_vm7 }
 0x32b   : > { %v372_v54 = vsub.f32 1.0, %v371_v53 }
 0x32d   : > { %v373_v55 = vmul.f32 %v1053_v52, %v372_v54 }
 0x32f   : > { %v374_v56 = vadd.f32 %v1053_v52, %v373_v55 }
 0x331   : > { %v378_v59 = vsel %vm377_vm9, %v1053_v52, %v374_v56 }
 0x332   : > { %v383_v62 = vsel %vm380_vm10, %v382_v60, %v378_v59 }
 0x333   : > { %v386_v0 = vmul.f32 %v383_v62, %v330_v37 }
 0x378   : > { %v389_v61 = vpop.permute.xlu2 %388 }
 0x379   : > { %v391_v63 = vmul.f32 %v389_v61, %v383_v62 }
 0x37b   : > { %393 = vrot.lane.b32.xlu2 %v391_v63, %s1201_s29 }
 0x3d5   : > { %v394_v1 = vpop.permute.xlu2 %393 }
 0x3d6   : > { %v396_v2 = vadd.f32 %v394_v1, %v386_v0 }
 0x3d8   : > { %1054 = vtanh.f32 %v396_v2 }
 0x3de   : > { %v1055_v3 = vpop.eup %1054 }
 0x3df   : > { %399 = vrot.lane.b32.xlu0 %v1055_v3, %s1200_s5 }
 0x451   : > { %v400_v4 = vpop.permute.xlu0 %399 }
 0x452   : > { %v1350_v5 = vmul.f32 %v400_v4, %v383_v62 }
 0x454   : > { %410 = vrot.lane.b32.xlu1 %v1350_v5, %s1200_s5 }
 0x4c6   : > { %v411_v7 = vpop.permute.xlu1 %410 }
 0x4c7   : > { %v413_v8 = vsel %vm256_vm1, %v409_v6, %v411_v7 }
 0x4c8   : > { %v414_v9 = vpack.c.bf16 %v413_v8, %v413_v8 }
 0x4ca   : > { %969 = vmatmul.msk.bf16.vlgmr.msra.gmra.mxu2 %vm283_vm2, %v414_v9 }
 0x54d   : > { %v427_v10 = vpop.f32.mrf.mxu2 }
 0x54e   : > { %v428_v11 = vadd.f32 %v1334_v15, %v427_v10 }
 0x550   : > { %1056 = vtanh.f32 %v428_v11  ;;  %v970_v14 = vmul.f32 -1.442695, %v428_v11 }
 0x552   : > { %1058 = vpow2.f32 %v970_v14 }
 0x555   : > { %v429_v12 = vpop.f32.mrf.mxu2 }
 0x556   : > { %v1057_v13 = vpop.eup %1056 }
 0x557   : > { %453 = vrot.lane.b32.xlu2 %v1057_v13, %s1200_s5 }
 0x558   : > { %v1059_v16 = vpop.eup %1058 }
 0x559   : > { %v434_v17 = vadd.f32 1.0, %v1059_v16 }
 0x55b   : > { %1060 = vrcp.f32 %v434_v17  ;;  %v446_v23 = vand.u32 2147483648, %v434_v17  ;;  %vm440_vm12 = vweird.f32 %v434_v17  ;;  %v444_v24 = vand.u32 2147483647, %v434_v17 }
 0x55d   : > { %v447_v26 = vor.u32 1.1754944e-38, %v446_v23  ;;  %vm445_vm14 = vcmp.eq.f32.partialorder %v444_v24, 8.507059e+37 }
 0x561   : > { %v1061_v18 = vpop.eup %1060 }
 0x562   : > { %v436_v19 = vmul.f32 %v1061_v18, %v434_v17  ;;  %vm441_vm11 = vweird.f32 %v1061_v18 }
 0x563   : > { %vm442_vm13 = vmor %vm440_vm12, %vm441_vm11 }
 0x564   : > { %v437_v20 = vsub.f32 1.0, %v436_v19 }
 0x566   : > { %v438_v21 = vmul.f32 %v1061_v18, %v437_v20 }
 0x568   : > { %v439_v22 = vadd.f32 %v1061_v18, %v438_v21 }
 0x56a   : > { %v443_v25 = vsel %vm442_vm13, %v1061_v18, %v439_v22 }
 0x56b   : > { %v448_v28 = vsel %vm445_vm14, %v447_v26, %v443_v25 }
 0x56c   : > { %v451_v30 = vmul.f32 %v448_v28, %v396_v2  ;;  %v539_v2 = vld [vmem:[#allocation2 + $0x8] sm:$0x3] }
 0x5b1   : > { %v454_v27 = vpop.permute.xlu2 %453 }
 0x5b2   : > { %v456_v29 = vmul.f32 %v454_v27, %v448_v28 }
 0x5b4   : > { %458 = vrot.lane.b32.xlu0 %v456_v29, %s1201_s29 }
 0x626   : > { %v459_v31 = vpop.permute.xlu0 %458 }
 0x627   : > { %v461_v32 = vadd.f32 %v459_v31, %v451_v30 }
 0x629   : > { %1062 = vtanh.f32 %v461_v32 }
 0x62f   : > { %v1063_v33 = vpop.eup %1062 }
 0x630   : > { %464 = vrot.lane.b32.xlu1 %v1063_v33, %s1200_s5  ;;  %v604_v33 = vld [vmem:[#allocation2 + $0xa] sm:$0x3] }
 0x6a2   : > { %v465_v34 = vpop.permute.xlu1 %464 }
 0x6a3   : > { %v1360_v35 = vmul.f32 %v465_v34, %v448_v28 }
 0x6a5   : > { %475 = vrot.lane.b32.xlu2 %v1360_v35, %s1200_s5 }
 0x6ff   : > { %v476_v37 = vpop.permute.xlu2 %475 }
 0x700   : > { %v478_v38 = vsel %vm256_vm1, %v474_v36, %v476_v37 }
 0x701   : > { %v479_v39 = vpack.c.bf16 %v478_v38, %v478_v38 }
 0x703   : > { %971 = vmatmul.msk.bf16.vlgmr.msra.gmra.mxu3 %vm283_vm2, %v479_v39 }
 0x786   : > { %v492_v41 = vpop.f32.mrf.mxu3 }
 0x787   : > { %v493_v42 = vadd.f32 %v1334_v15, %v492_v41 }
 0x789   : > { %1064 = vtanh.f32 %v493_v42  ;;  %v972_v45 = vmul.f32 -1.442695, %v493_v42 }
 0x78b   : > { %1066 = vpow2.f32 %v972_v45 }
 0x78e   : > { %v494_v43 = vpop.f32.mrf.mxu3 }
 0x78f   : > { %v1065_v44 = vpop.eup %1064 }
 0x790   : > { %518 = vrot.lane.b32.xlu0 %v1065_v44, %s1200_s5 }
 0x791   : > { %v1067_v46 = vpop.eup %1066 }
 0x792   : > { %v499_v47 = vadd.f32 1.0, %v1067_v46 }
 0x794   : > { %1068 = vrcp.f32 %v499_v47  ;;  %v511_v53 = vand.u32 2147483648, %v499_v47  ;;  %vm505_vm0 = vweird.f32 %v499_v47  ;;  %v509_v54 = vand.u32 2147483647, %v499_v47 }
 0x796   : > { %v512_v56 = vor.u32 1.1754944e-38, %v511_v53  ;;  %vm510_vm4 = vcmp.eq.f32.partialorder %v509_v54, 8.507059e+37 }
 0x79a   : > { %v1069_v48 = vpop.eup %1068 }
 0x79b   : > { %v501_v49 = vmul.f32 %v1069_v48, %v499_v47  ;;  %vm506_vm15 = vweird.f32 %v1069_v48 }
 0x79c   : > { %vm507_vm3 = vmor %vm505_vm0, %vm506_vm15 }
 0x79d   : > { %v502_v50 = vsub.f32 1.0, %v501_v49 }
 0x79f   : > { %v503_v51 = vmul.f32 %v1069_v48, %v502_v50 }
 0x7a1   : > { %v504_v52 = vadd.f32 %v1069_v48, %v503_v51 }
 0x7a3   : > { %v508_v55 = vsel %vm507_vm3, %v1069_v48, %v504_v52 }
 0x7a4   : > { %v513_v58 = vsel %vm510_vm4, %v512_v56, %v508_v55 }
 0x7a5   : > { %v516_v60 = vmul.f32 %v513_v58, %v461_v32 }
 0x802   : > { %v519_v57 = vpop.permute.xlu0 %518 }
 0x803   : > { %v521_v59 = vmul.f32 %v519_v57, %v513_v58 }
 0x805   : > { %523 = vrot.lane.b32.xlu1 %v521_v59, %s1201_s29 }
 0x877   : > { %v524_v61 = vpop.permute.xlu1 %523 }
 0x878   : > { %v526_v62 = vadd.f32 %v524_v61, %v516_v60 }
 0x87a   : > { %1070 = vtanh.f32 %v526_v62 }
 0x880   : > { %v1071_v63 = vpop.eup %1070 }
 0x881   : > { %529 = vrot.lane.b32.xlu2 %v1071_v63, %s1200_s5 }
 0x8db   : > { %v530_v0 = vpop.permute.xlu2 %529 }
 0x8dc   : > { %v1370_v1 = vmul.f32 %v530_v0, %v513_v58  ;;  %v669_v0 = vld [vmem:[#allocation2 + $0xc] sm:$0x3] }
 0x8de   : > { %540 = vrot.lane.b32.xlu0 %v1370_v1, %s1200_s5 }
 0x950   : > { %v541_v3 = vpop.permute.xlu0 %540 }
 0x951   : > { %v543_v4 = vsel %vm256_vm1, %v539_v2, %v541_v3 }
 0x952   : > { %v544_v6 = vpack.c.bf16 %v543_v4, %v543_v4 }
 0x954   : > { %973 = vmatmul.msk.bf16.vlgmr.msrb.gmra.mxu0 %vm283_vm2, %v544_v6 }
 0x9d1   : > { %v557_v7 = vpop.f32.mrf.mxu0 }
 0x9d2   : > { %v558_v8 = vadd.f32 %v1334_v15, %v557_v7 }
 0x9d4   : > { %1072 = vtanh.f32 %v558_v8  ;;  %v974_v11 = vmul.f32 -1.442695, %v558_v8 }
 0x9d6   : > { %1074 = vpow2.f32 %v974_v11 }
 0x9d9   : > { %v559_v9 = vpop.f32.mrf.mxu0 }
 0x9da   : > { %v1073_v10 = vpop.eup %1072 }
 0x9db   : > { %583 = vrot.lane.b32.xlu1 %v1073_v10, %s1200_s5 }
 0x9dc   : > { %v1075_v12 = vpop.eup %1074 }
 0x9dd   : > { %v564_v13 = vadd.f32 1.0, %v1075_v12 }
 0x9df   : > { %1076 = vrcp.f32 %v564_v13  ;;  %v576_v20 = vand.u32 2147483648, %v564_v13  ;;  %vm570_vm6 = vweird.f32 %v564_v13  ;;  %v574_v21 = vand.u32 2147483647, %v564_v13 }
 0x9e1   : > { %v577_v23 = vor.u32 1.1754944e-38, %v576_v20  ;;  %vm575_vm8 = vcmp.eq.f32.partialorder %v574_v21, 8.507059e+37 }
 0x9e5   : > { %v1077_v14 = vpop.eup %1076 }
 0x9e6   : > { %v566_v16 = vmul.f32 %v1077_v14, %v564_v13  ;;  %vm571_vm5 = vweird.f32 %v1077_v14 }
 0x9e7   : > { %vm572_vm7 = vmor %vm570_vm6, %vm571_vm5  ;;  %vm341_vm5 = vcmask 254976  }
 0x9e8   : > { %v567_v17 = vsub.f32 1.0, %v566_v16 }
 0x9ea   : > { %v568_v18 = vmul.f32 %v1077_v14, %v567_v17 }
 0x9ec   : > { %v569_v19 = vadd.f32 %v1077_v14, %v568_v18 }
 0x9ee   : > { %v573_v22 = vsel %vm572_vm7, %v1077_v14, %v569_v19 }
 0x9ef   : > { %v578_v25 = vsel %vm575_vm8, %v577_v23, %v573_v22 }
 0x9f0   : > { %v581_v27 = vmul.f32 %v578_v25, %v526_v62 }
 0xa4d   : > { %v584_v24 = vpop.permute.xlu1 %583 }
 0xa4e   : > { %v586_v26 = vmul.f32 %v584_v24, %v578_v25 }
 0xa50   : > { %588 = vrot.lane.b32.xlu2 %v586_v26, %s1201_s29 }
 0xaaa   : > { %v589_v28 = vpop.permute.xlu2 %588 }
 0xaab   : > { %v591_v29 = vadd.f32 %v589_v28, %v581_v27 }
 0xaad   : > { %1078 = vtanh.f32 %v591_v29 }
 0xab3   : > { %v1079_v30 = vpop.eup %1078 }
 0xab4   : > { %594 = vrot.lane.b32.xlu0 %v1079_v30, %s1200_s5 }
 0xb26   : > { %v595_v31 = vpop.permute.xlu0 %594 }
 0xb27   : > { %v1380_v32 = vmul.f32 %v595_v31, %v578_v25 }
 0xb29   : > { %605 = vrot.lane.b32.xlu1 %v1380_v32, %s1200_s5 }
 0xb9b   : > { %v606_v34 = vpop.permute.xlu1 %605 }
 0xb9c   : > { %v608_v36 = vsel %vm256_vm1, %v604_v33, %v606_v34  ;;  %v734_v33 = vld [vmem:[#allocation2 + $0xe] sm:$0x3] }
 0xb9d   : > { %v609_v37 = vpack.c.bf16 %v608_v36, %v608_v36 }
 0xb9f   : > { %975 = vmatmul.msk.bf16.vlgmr.msrb.gmra.mxu1 %vm283_vm2, %v609_v37 }
 0xc1c   : > { %v622_v38 = vpop.f32.mrf.mxu1 }
 0xc1d   : > { %v623_v39 = vadd.f32 %v1334_v15, %v622_v38 }
 0xc1f   : > { %1080 = vtanh.f32 %v623_v39  ;;  %v976_v43 = vmul.f32 -1.442695, %v623_v39 }
 0xc21   : > { %1082 = vpow2.f32 %v976_v43 }
 0xc24   : > { %v624_v41 = vpop.f32.mrf.mxu1 }
 0xc25   : > { %v1081_v42 = vpop.eup %1080 }
 0xc26   : > { %648 = vrot.lane.b32.xlu2 %v1081_v42, %s1200_s5 }
 0xc27   : > { %v1083_v44 = vpop.eup %1082 }
 0xc28   : > { %v629_v45 = vadd.f32 1.0, %v1083_v44 }
 0xc2a   : > { %1084 = vrcp.f32 %v629_v45  ;;  %v641_v51 = vand.u32 2147483648, %v629_v45  ;;  %vm635_vm10 = vweird.f32 %v629_v45  ;;  %v639_v52 = vand.u32 2147483647, %v629_v45 }
 0xc2c   : > { %v642_v54 = vor.u32 1.1754944e-38, %v641_v51  ;;  %vm640_vm12 = vcmp.eq.f32.partialorder %v639_v52, 8.507059e+37 }
 0xc30   : > { %v1085_v46 = vpop.eup %1084 }
 0xc31   : > { %v631_v47 = vmul.f32 %v1085_v46, %v629_v45  ;;  %vm636_vm9 = vweird.f32 %v1085_v46 }
 0xc32   : > { %vm637_vm11 = vmor %vm635_vm10, %vm636_vm9 }
 0xc33   : > { %v632_v48 = vsub.f32 1.0, %v631_v47 }
 0xc35   : > { %v633_v49 = vmul.f32 %v1085_v46, %v632_v48 }
 0xc37   : > { %v634_v50 = vadd.f32 %v1085_v46, %v633_v49 }
 0xc39   : > { %v638_v53 = vsel %vm637_vm11, %v1085_v46, %v634_v50 }
 0xc3a   : > { %v643_v56 = vsel %vm640_vm12, %v642_v54, %v638_v53 }
 0xc3b   : > { %v646_v58 = vmul.f32 %v643_v56, %v591_v29 }
 0xc80   : > { %v649_v55 = vpop.permute.xlu2 %648 }
 0xc81   : > { %v651_v57 = vmul.f32 %v649_v55, %v643_v56 }
 0xc83   : > { %653 = vrot.lane.b32.xlu0 %v651_v57, %s1201_s29 }
 0xcf5   : > { %v654_v59 = vpop.permute.xlu0 %653 }
 0xcf6   : > { %v656_v60 = vadd.f32 %v654_v59, %v646_v58 }
 0xcf8   : > { %1086 = vtanh.f32 %v656_v60 }
 0xcfe   : > { %v1087_v61 = vpop.eup %1086 }
 0xcff   : > { %659 = vrot.lane.b32.xlu1 %v1087_v61, %s1200_s5 }
 0xd71   : > { %v660_v62 = vpop.permute.xlu1 %659 }
 0xd72   : > { %v1390_v63 = vmul.f32 %v660_v62, %v643_v56 }
 0xd74   : > { %670 = vrot.lane.b32.xlu2 %v1390_v63, %s1200_s5 }
 0xdce   : > { %v671_v2 = vpop.permute.xlu2 %670 }
 0xdcf   : > { %v673_v3 = vsel %vm256_vm1, %v669_v0, %v671_v2 }
 0xdd0   : > { %v674_v4 = vpack.c.bf16 %v673_v3, %v673_v3 }
 0xdd2   : > { %977 = vmatmul.msk.bf16.vlgmr.msrb.gmra.mxu2 %vm283_vm2, %v674_v4 }
 0xe55   : > { %v687_v6 = vpop.f32.mrf.mxu2 }
 0xe56   : > { %v688_v7 = vadd.f32 %v1334_v15, %v687_v6 }
 0xe58   : > { %1088 = vtanh.f32 %v688_v7  ;;  %v978_v10 = vmul.f32 -1.442695, %v688_v7 }
 0xe5a   : > { %1090 = vpow2.f32 %v978_v10 }
 0xe5d   : > { %v689_v8 = vpop.f32.mrf.mxu2 }
 0xe5e   : > { %v1089_v9 = vpop.eup %1088 }
 0xe5f   : > { %713 = vrot.lane.b32.xlu0 %v1089_v9, %s1200_s5 }
 0xe60   : > { %v1091_v11 = vpop.eup %1090 }
 0xe61   : > { %v694_v12 = vadd.f32 1.0, %v1091_v11 }
 0xe63   : > { %1092 = vrcp.f32 %v694_v12  ;;  %v706_v19 = vand.u32 2147483648, %v694_v12  ;;  %vm700_vm14 = vweird.f32 %v694_v12  ;;  %v704_v20 = vand.u32 2147483647, %v694_v12 }
 0xe65   : > { %v707_v22 = vor.u32 1.1754944e-38, %v706_v19  ;;  %vm705_vm0 = vcmp.eq.f32.partialorder %v704_v20, 8.507059e+37 }
 0xe69   : > { %v1093_v13 = vpop.eup %1092 }
 0xe6a   : > { %v696_v14 = vmul.f32 %v1093_v13, %v694_v12  ;;  %vm701_vm13 = vweird.f32 %v1093_v13 }
 0xe6b   : > { %vm702_vm15 = vmor %vm700_vm14, %vm701_vm13 }
 0xe6c   : > { %v697_v16 = vsub.f32 1.0, %v696_v14 }
 0xe6e   : > { %v698_v17 = vmul.f32 %v1093_v13, %v697_v16 }
 0xe70   : > { %v699_v18 = vadd.f32 %v1093_v13, %v698_v17 }
 0xe72   : > { %v703_v21 = vsel %vm702_vm15, %v1093_v13, %v699_v18 }
 0xe73   : > { %v708_v24 = vsel %vm705_vm0, %v707_v22, %v703_v21 }
 0xe74   : > { %v711_v26 = vmul.f32 %v708_v24, %v656_v60 }
 0xed1   : > { %v714_v23 = vpop.permute.xlu0 %713 }
 0xed2   : > { %v716_v25 = vmul.f32 %v714_v23, %v708_v24 }
 0xed4   : > { %718 = vrot.lane.b32.xlu1 %v716_v25, %s1201_s29 }
 0xf46   : > { %v719_v27 = vpop.permute.xlu1 %718 }
 0xf47   : > { %v721_v28 = vadd.f32 %v719_v27, %v711_v26 }
 0xf49   : > { %1094 = vtanh.f32 %v721_v28 }
 0xf4f   : > { %v1095_v29 = vpop.eup %1094 }
 0xf50   : > { %724 = vrot.lane.b32.xlu2 %v1095_v29, %s1200_s5 }
 0xfaa   : > { %v725_v30 = vpop.permute.xlu2 %724 }
 0xfab   : > { %v727_v31 = vmul.f32 %v725_v30, %v708_v24 }
 0xfad   : > { %735 = vrot.lane.b32.xlu0 %v727_v31, %s1200_s5 }
0x101f   : > { %v736_v34 = vpop.permute.xlu0 %735 }
0x1020   : > { %v738_v36 = vsel %vm256_vm1, %v734_v33, %v736_v34 }
0x1021   : > { %v739_v37 = vpack.c.bf16 %v738_v36, %v738_v36 }
0x1023   : > { %979 = vmatmul.msk.bf16.vlgmr.msrb.gmra.mxu3 %vm283_vm2, %v739_v37 }
0x10a6   : > { %v752_v38 = vpop.f32.mrf.mxu3 }
0x10a7   : > { %v753_v39 = vadd.f32 %v1334_v15, %v752_v38 }
0x10a9   : > { %1096 = vtanh.f32 %v753_v39  ;;  %v980_v43 = vmul.f32 -1.442695, %v753_v39 }
0x10ab   : > { %1098 = vpow2.f32 %v980_v43 }
0x10ae   : > { %v754_v41 = vpop.f32.mrf.mxu3 }
0x10af   : > { %v1097_v42 = vpop.eup %1096 }
0x10b0   : > { %778 = vrot.lane.b32.xlu1 %v1097_v42, %s1200_s5 }
0x10b1   : > { %v1099_v44 = vpop.eup %1098 }
0x10b2   : > { %v759_v45 = vadd.f32 1.0, %v1099_v44 }
0x10b4   : > { %1100 = vrcp.f32 %v759_v45  ;;  %v771_v15 = vand.u32 2147483648, %v759_v45  ;;  %vm765_vm2 = vweird.f32 %v759_v45  ;;  %v769_v51 = vand.u32 2147483647, %v759_v45 }
0x10b6   : > { %v772_v53 = vor.u32 1.1754944e-38, %v771_v15  ;;  %vm770_vm4 = vcmp.eq.f32.partialorder %v769_v51, 8.507059e+37 }
0x10b8   : > { %404 = vrot.lane.b32.xlu1 %v1350_v5, %s1201_s29 }
0x10ba   : > { %v1101_v46 = vpop.eup %1100 }
0x10bb   : > { %v761_v47 = vmul.f32 %v1101_v46, %v759_v45  ;;  %vm766_vm1 = vweird.f32 %v1101_v46 }
0x10bc   : > { %vm767_vm3 = vmor %vm765_vm2, %vm766_vm1 }
0x10bd   : > { %v762_v48 = vsub.f32 1.0, %v761_v47 }
0x10bf   : > { %v763_v49 = vmul.f32 %v1101_v46, %v762_v48 }
0x10c1   : > { %v764_v50 = vadd.f32 %v1101_v46, %v763_v49 }
0x10c3   : > { %v768_v52 = vsel %vm767_vm3, %v1101_v46, %v764_v50 }
0x10c4   : > { %v773_v5 = vsel %vm770_vm4, %v772_v53, %v768_v52 }
0x10c5   : > { %v776_v57 = vmul.f32 %v773_v5, %v721_v28 }
0x1122   : > { %v779_v54 = vpop.permute.xlu1 %778 }
0x1123   : > { %v781_v55 = vmul.f32 %v779_v54, %v773_v5 }
0x1125   : > { %783 = vrot.lane.b32.xlu2 %v781_v55, %s1201_s29 }
0x112a   : > { %v405_v56 = vpop.permute.xlu1 %404 }
0x112b   : > { %407 = vst.msk [vmem:[#allocation2 + $0x2] sm:$0x3] %vm341_vm5, %v405_v56 }
0x117f   : > { %v784_v58 = vpop.permute.xlu2 %783 }
0x1180   : > { %v786_v59 = vadd.f32 %v784_v58, %v776_v57 }
0x1182   : > { %1102 = vtanh.f32 %v786_v59  ;;  %800 = vrot.lane.b32.xlu2 %v786_v59, %s1202_s7 }
0x1188   : > { %v1103_v60 = vpop.eup %1102 }
0x1189   : > { %789 = vrot.lane.b32.xlu0 %v1103_v60, %s1200_s5  ;;  %s1124_s5 = scalar_lea.hbm %s1489_s4, 4 }
0x118a   : > { %469 = vrot.lane.b32.xlu2 %v1360_v35, %s1201_s29  ;;  %p1126_p2 = scmp.lt.s32.totalorder %s1124_s5, %s1120_s23 }
0x118c   : > { %p1127_p3 = por %p1126_p2, %p1125_p1 }
0x118e   : > { %p1128_p4 = pnand %p1127_p3, %p1123_p0 }
0x1191   : > { %338 = vrot.lane.b32.xlu0 %v1340_v40, %s1201_s29 }
0x1192   : > { %664 = vrot.lane.b32.xlu2 %v1390_v63, %s1201_s29 }
0x1199   : > { %534 = vrot.lane.b32.xlu0 %v1370_v1, %s1201_s29 }
0x11a1   : > { %729 = vrot.lane.b32.xlu0 %v727_v31, %s1201_s29 }
0x11dc   : > { %v801_v61 = vpop.permute.xlu2 %800 }
0x11dd   : > { %803 = vst.msk [vmem:[%s1296_s12] sm:$0x3] %vm341_vm5, %v801_v61 }
0x11e4   : > { %v470_v62 = vpop.permute.xlu2 %469 }
0x11e5   : > { %472 = vst.msk [vmem:[#allocation2 + $0x4] sm:$0x3] %vm341_vm5, %v470_v62 }
0x11ec   : > { %v665_v35 = vpop.permute.xlu2 %664 }
0x11ed   : > { %667 = vst.msk [vmem:[#allocation2 + $0xa] sm:$0x3] %vm341_vm5, %v665_v35 }
0x11fb   : > { %v790_v40 = vpop.permute.xlu0 %789 }
0x11fc   : > { %v792_v1 = vmul.f32 %v790_v40, %v773_v5 }
0x11fd   : > { %1131 = shalt.err (!%p1128_p4)
}
0x11fe   : > { %993 = dma.vmem_to_hbm [thread:$0]  (%p1266_p5), %s837_s13, 32, %s839_s14, %s810_s20   ;;  %794 = vrot.lane.b32.xlu1 %v792_v1, %s1201_s29 }
0x11ff   : > { %s820_s9 = scalar_lea.hbm %s1488_s3, %s983_s28  ;;  %s822_s13 = sshll.u32 %s1294_s11, 4  ;;  %s823_s13 = int_to_ptr.vmem [resolvable:$true] %s822_s13 }
0x1200   : > { %s824_s14 = sshll.u32 %s820_s9, 4  ;;  %s1152_s28 = scalar_lea.hbm %s1488_s3, 4  ;;  %s825_s14 = int_to_ptr.hbm [resolvable:$true] %s824_s14 }
0x1201   : > { %s1146_s20 = sshra.s32 %s825_s14, 4  ;;  %s1147_s20 = int_to_ptr.hbm [resolvable:$true] %s1146_s20 }
0x1202   : > { %s1148_s22 = scalar_lea.hbm %s1147_s20, 2  ;;  %p1153_p10 = scmp.lt.s32.totalorder %s1147_s20, %s1488_s3 }
0x1203   : > { %v339_v63 = vpop.permute.xlu0 %338  ;;  %p1149_p7 = scmp.ne.s32.totalorder %s1147_s20, %s1148_s22  ;;  %p1154_p11 = scmp.lt.s32.totalorder %s1152_s28, %s1148_s22 }
0x1204   : > { %342 = vst.msk [vmem:[#allocation2] sm:$0x3] %vm341_vm5, %v339_v63 }
0x1205   : > { %p1150_p8 = pnand %p1149_p7, %p1266_p5  ;;  %p1155_p12 = por %p1154_p11, %p1153_p10 }
0x1206   : > { %599 = vrot.lane.b32.xlu1 %v1380_v32, %s1201_s29  ;;  %s805_s29 = scalar_lea.sflag [#allocation4], %s1277_s27 }
0x1207   : > { %p1151_p9 = pneg %p1150_p8 }
0x1209   : > { %p1156_p13 = pnand %p1155_p12, %p1151_p9 }
0x120b   : > { %v535_v0 = vpop.permute.xlu0 %534 }
0x120c   : > { %537 = vst.msk [vmem:[#allocation2 + $0x6] sm:$0x3] %vm341_vm5, %v535_v0 }
0x1213   : > { %v730_v2 = vpop.permute.xlu0 %729 }
0x1214   : > { %732 = vst.msk [vmem:[#allocation2 + $0xc] sm:$0x3] %vm341_vm5, %v730_v2 }
0x1270   : > { %v795_v3 = vpop.permute.xlu1 %794 }
0x1271   : > { %797 = vst.msk [vmem:[#allocation2 + $0xe] sm:$0x3] %vm341_vm5, %v795_v3 }
0x1272   : > { %798 = vst.msk [vmem:[%s1294_s11] sm:$0x3] %vm341_vm5, %v795_v3 }
0x1273   : > { %1159 = shalt.err (!%p1156_p13)
}
0x1274   : > { %992 = dma.vmem_to_hbm [thread:$0]  (%p1266_p5), %s823_s13, 32, %s825_s14, %s805_s29  }
0x1278   : > { %v600_v32 = vpop.permute.xlu1 %599 }
0x1279   : > { %602 = vst.msk [vmem:[#allocation2 + $0x8] sm:$0x3] %vm341_vm5, %v600_v32 }
0x127a PF: > { %p1003_p0 = scmp.ge.s32.totalorder %s1198_s18, 2  ;;  %s850_s27 = sand.u32 1, %s1186_s15  }
0x127b   : > { %s851_s11 = scalar_lea.sflag [#allocation4], %s850_s27 }
0x127c   : > { %p997_p1 = pnand %p1003_p0, %p1270_p6 }
0x127e   : > { %p998_p2 = pneg %p997_p1 }
0x1280   : > { %1177 = dma.done.wait (%p998_p2), %s851_s11, 32  }
0x1281   : > { %1179 = vsyncadd (%p998_p2), %s851_s11, 4294967264  ;;  %s861_s5 = scalar_lea.sflag [#allocation6], %s850_s27 }
0x1282   : > { %1181 = dma.done.wait (%p998_p2), %s861_s5, 32  }
0x1283   : > { %1183 = vsyncadd (%p998_p2), %s861_s5, 4294967264  ;;  %p18_p5 = scmp.ge.s32.totalorder %s1253_s21, 4   ;;  %s1492_s15 = smov %s1190_s16 }
0x1284   : > { %s1493_s16 = smov %s1194_s17  ;;  %s1494_s17 = smov %s1264_s24 }
0x1285   : > { %s1495_s18 = smov %s1253_s21  ;;  %20 = sbr.rel (!%p18_p5) target bundleno = 5 (0x5), region = 98 }
0x128a   :  { %867 = vsyncpa [#allocation4], 1 }
0x128b   :  { %869 = vsyncpa [#allocation4 + $0x1], 1 }
0x128c   :  { %870 = vsyncpa [#allocation6], 1 }
0x128d   :  { %872 = vsyncpa [#allocation6 + $0x1], 1 }

</bundles_post_ra>
